<compile_context>
chip_gen: v7x
topology: tpu7x:2x2x1
jax: 0.10.0
libtpu: 0.0.40
codegen_flags: <defaults>
</compile_context>

<pallas_src>
import math

import jax
import jax.numpy as jnp
import numpy as np
from jax import lax
from jax.experimental import pallas as pl
from jax.experimental.pallas import tpu as pltpu


# ----------------------------- Pallas kernel -------------------------------

def _aseirnn_kernel(x_ref, w_ih_t_ref, eff_w_t_ref, b_cat_ref,
                    alpha_ref, om_alpha_ref, alpha_s_ref, om_alpha_s_ref,
                    rnn_out_ref,
                    u_ref, out_prev_ref, state_ref, syn_ref):
    # x_ref:        (Tc, Tb, I_pad)       time chunk of inputs
    # w_ih_t_ref:   (I_pad, H_pad)        W_ih^T (padded)
    # eff_w_t_ref:  (H_pad, H_pad)        (|W_hh|*mask)^T (padded)
    # b_cat_ref:    (1, H_pad)            b_ih + b_hh
    # alpha/om_alpha/alpha_s/om_alpha_s:  (1, H_pad)   a, 1-a, a_s, 1-a_s
    # rnn_out_ref:  (Tc, Tb, H_pad)
    # u_ref:        (Tc, Tb, H_pad)       per-chunk input projection (scratch)
    # out_prev_ref / state_ref / syn_ref: (Tb, H_pad)  cross-chunk carry
    tc, tb, i_pad = x_ref.shape
    h_pad = state_ref.shape[1]

    # init_hidden / init synapse at the first time chunk of each batch tile.
    @pl.when(pl.program_id(1) == 0)
    def _():
        out_prev_ref[...] = jnp.zeros_like(out_prev_ref)
        state_ref[...] = jnp.zeros_like(state_ref)
        syn_ref[...] = jnp.zeros_like(syn_ref)

    # ---- input projection for the whole chunk: ONE big-M matmul, entirely
    # ---- off the serial recurrent chain (bias folded in here too).
    w_ih_t = w_ih_t_ref[...]
    x2d = x_ref[...].reshape(tc * tb, i_pad).astype(w_ih_t.dtype)
    u = jnp.dot(x2d, w_ih_t, preferred_element_type=jnp.float32) + b_cat_ref[...]
    u_ref[...] = u.reshape(tc, tb, h_pad)

    # Time-invariant operands: load once per grid step; hoist the (1,H)->(B,H)
    # broadcasts out of the unrolled time loop (JAX does not CSE them).
    eff_w_t = eff_w_t_ref[...]
    alpha = jnp.broadcast_to(alpha_ref[...], (tb, h_pad))
    om_alpha = jnp.broadcast_to(om_alpha_ref[...], (tb, h_pad))
    alpha_s = jnp.broadcast_to(alpha_s_ref[...], (tb, h_pad))
    om_alpha_s = jnp.broadcast_to(om_alpha_s_ref[...], (tb, h_pad))

    def step(s, carry):
        state, out_prev, syn = carry
        # Recurrent matmul: K = H_pad only (single K-pass even on v5e's MXU).
        pre = jnp.dot(out_prev.astype(eff_w_t.dtype), eff_w_t,
                      preferred_element_type=jnp.float32) + u_ref[s]
        # s_new = a_s*(pre - syn) + syn  ==  a_s*pre + (1-a_s)*syn
        s_new = alpha_s * pre + om_alpha_s * syn
        # state = a*(tanh(s_new) - state) + state  ==  a*tanh + (1-a)*state
        state = alpha * jnp.tanh(s_new) + om_alpha * state
        # sigma_rec == 0 so the additive Gaussian noise term is identically 0.
        # TODO(synk): add pltpu.prng_seed/prng_random_bits noise if sigma_rec != 0.
        output = jnp.tanh(state)
        rnn_out_ref[s] = output
        return (state, output, s_new)

    carry0 = (state_ref[...], out_prev_ref[...], syn_ref[...])
    state, output, syn = lax.fori_loop(0, tc, step, carry0, unroll=True)

    # Cross-chunk carry: one VMEM store per chunk (not per step).
    state_ref[...] = state
    out_prev_ref[...] = output
    syn_ref[...] = syn


# ------------------------------- wrapper ------------------------------------

def _round_up(n, m):
    return ((n + m - 1) // m) * m


def aseirnn_forward(x, params, e_size, *, time_chunk=16, use_bf16_matmul=False):
    """x: (T, B, I) float32.  Returns (out (T,B,O), rnn_output (T,B,H))."""
    T, B, I = x.shape
    H = params["w_hh"].shape[0]

    # Pad to (8,128)-aligned tiles; padded rows/cols carry zero weights /
    # zero alphas so padded hidden units stay identically zero and are
    # sliced off afterwards.
    B_pad = _round_up(max(B, 8), 8)
    H_pad = _round_up(H, 128)
    I_pad = _round_up(I, 128)
    tc = max(1, min(time_chunk, T))
    T_pad = _round_up(T, tc)
    tb = B_pad                      # single batch tile at these sizes
    n_b = B_pad // tb
    n_t = T_pad // tc

    mxu_dtype = jnp.bfloat16 if use_bf16_matmul else jnp.float32

    # ---- hoisted, time-invariant precompute (EIRecLinear effective weight,
    # ---- all transposes, fused bias, 1-alpha terms) ----
    eff_w_t = (jnp.abs(params["w_hh"]) * params["mask"]).T     # (H, H)
    w_ih_t = params["w_ih"].T                                  # (I, H)

    w_ih_t_p = jnp.zeros((I_pad, H_pad), mxu_dtype).at[:I, :H].set(
        w_ih_t.astype(mxu_dtype))
    eff_w_t_p = jnp.zeros((H_pad, H_pad), mxu_dtype).at[:H, :H].set(
        eff_w_t.astype(mxu_dtype))

    b_cat = jnp.zeros((1, H_pad), jnp.float32).at[:, :H].set(
        params["b_ih"] + params["b_hh"])
    alpha = jnp.zeros((1, H_pad), jnp.float32).at[:, :H].set(params["alpha"])
    om_alpha = jnp.zeros((1, H_pad), jnp.float32).at[:, :H].set(
        1.0 - params["alpha"])
    alpha_s = jnp.zeros((1, H_pad), jnp.float32).at[:, :H].set(params["alpha_s"])
    om_alpha_s = jnp.zeros((1, H_pad), jnp.float32).at[:, :H].set(
        1.0 - params["alpha_s"])

    x_p = jnp.zeros((T_pad, B_pad, I_pad), jnp.float32).at[:T, :B, :I].set(x)

    grid_spec = pltpu.PrefetchScalarGridSpec(
        num_scalar_prefetch=0,
        grid=(n_b, n_t),                       # (batch tiles, time chunks)
        in_specs=[
            pl.BlockSpec((tc, tb, I_pad), lambda b, t: (t, b, 0)),      # x
            pl.BlockSpec((I_pad, H_pad), lambda b, t: (0, 0)),          # W_ih^T
            pl.BlockSpec((H_pad, H_pad), lambda b, t: (0, 0)),          # effW^T
            pl.BlockSpec((1, H_pad), lambda b, t: (0, 0)),              # b_cat
            pl.BlockSpec((1, H_pad), lambda b, t: (0, 0)),              # alpha
            pl.BlockSpec((1, H_pad), lambda b, t: (0, 0)),              # 1-alpha
            pl.BlockSpec((1, H_pad), lambda b, t: (0, 0)),              # alpha_s
            pl.BlockSpec((1, H_pad), lambda b, t: (0, 0)),              # 1-alpha_s
        ],
        out_specs=pl.BlockSpec((tc, tb, H_pad), lambda b, t: (t, b, 0)),
        scratch_shapes=[
            pltpu.VMEM((tc, tb, H_pad), jnp.float32),   # u (input projection)
            pltpu.VMEM((tb, H_pad), jnp.float32),       # output carry
            pltpu.VMEM((tb, H_pad), jnp.float32),       # state carry
            pltpu.VMEM((tb, H_pad), jnp.float32),       # synapse carry
        ],
    )

    rnn_padded = pl.pallas_call(
        _aseirnn_kernel,
        grid_spec=grid_spec,
        out_shape=jax.ShapeDtypeStruct((T_pad, B_pad, H_pad), jnp.float32),
        compiler_params=pltpu.CompilerParams(
            dimension_semantics=("parallel", "arbitrary"),  # batch ||, time seq
            vmem_limit_bytes=32 * 1024 * 1024),
    )(x_p, w_ih_t_p, eff_w_t_p, b_cat, alpha, om_alpha, alpha_s, om_alpha_s)

    rnn_output = rnn_padded[:T, :B, :H]

    # Readout has no recurrence dependence: one batched, lane-dense XLA matmul
    # over all timesteps instead of a narrow per-step matmul in the kernel.
    out = rnn_output[..., :e_size] @ params["w_fc"].T + params["b_fc"]
    return out, rnn_output


# --------------------------- pure-JAX reference -----------------------------

def aseirnn_reference(x, params, e_size):
    T, B, I = x.shape
    H = params["w_hh"].shape[0]
    eff_w = jnp.abs(params["w_hh"]) * params["mask"]

    def step(carry, x_t):
        state, output, syn = carry
        inp = x_t @ params["w_ih"].T + params["b_ih"]
        rec = output @ eff_w.T + params["b_hh"]
        s_new = params["alpha_s"] * (inp + rec - syn) + syn
        state = params["alpha"] * (jnp.tanh(s_new) - state) + state
        output = jnp.tanh(state)
        out_t = output[:, :e_size] @ params["w_fc"].T + params["b_fc"]
        return (state, output, s_new), (out_t, output)

    init = (jnp.zeros((B, H), jnp.float32),
            jnp.zeros((B, H), jnp.float32),
            jnp.zeros((B, H), jnp.float32))
    _, (out, rnn_output) = jax.lax.scan(step, init, x)
    return out, rnn_output


# --------------------------- parameter construction --------------------------

def make_params(key, input_size, hidden_size, output_size, e_prop, alpha_values):
    e_size = int(e_prop * hidden_size)
    i_size = hidden_size - e_size
    keys = jax.random.split(key, 8)

    def kaiming_uniform(k, shape):
        fan_in = shape[1]
        bound = 1.0 / math.sqrt(fan_in)      # kaiming_uniform with a=sqrt(5)
        return jax.random.uniform(k, shape, jnp.float32, -bound, bound)

    # input2h: Linear(input_size, hidden_size)
    w_ih = kaiming_uniform(keys[0], (hidden_size, input_size))
    b_ih = jax.random.uniform(keys[1], (1, hidden_size), jnp.float32,
                              -1.0 / math.sqrt(input_size),
                              1.0 / math.sqrt(input_size))

    # h2h: EIRecLinear(hidden_size, e_prop)
    w_hh = kaiming_uniform(keys[2], (hidden_size, hidden_size))
    w_hh = w_hh.at[:, :e_size].divide(e_size / i_size)
    b_hh = jax.random.uniform(keys[3], (1, hidden_size), jnp.float32,
                              -1.0 / math.sqrt(hidden_size),
                              1.0 / math.sqrt(hidden_size))
    mask_np = np.tile([1.0] * e_size + [-1.0] * i_size, (hidden_size, 1))
    np.fill_diagonal(mask_np, 0.0)
    mask = jnp.asarray(mask_np, jnp.float32)

    # fc: Linear(e_size, output_size) — reads excitatory units only
    w_fc = kaiming_uniform(keys[4], (output_size, e_size))
    b_fc = jax.random.uniform(keys[5], (1, output_size), jnp.float32,
                              -1.0 / math.sqrt(e_size),
                              1.0 / math.sqrt(e_size))

    # per-neuron alphas drawn from the set of unique alpha values
    unique_alphas = jnp.asarray(np.unique(np.asarray(alpha_values, np.float32)))
    idx = jax.random.randint(keys[6], (1, hidden_size), 0, unique_alphas.shape[0])
    alpha = unique_alphas[idx].astype(jnp.float32)
    alpha_s = alpha  # ASEIRNN: alpha_s initialized as a copy of alpha

    params = dict(w_ih=w_ih, b_ih=b_ih, w_hh=w_hh, b_hh=b_hh, mask=mask,
                  w_fc=w_fc, b_fc=b_fc, alpha=alpha, alpha_s=alpha_s)
    return params, e_size


# ------------------------------------ main -----------------------------------

if __name__ == "__main__":
    seq_len, batch, input_size, hidden_size, output_size = 8, 4, 16, 32, 4
    e_prop = 0.8
    alpha_values = [0.2, 0.5]   # unique adaptive time constants

    key = jax.random.PRNGKey(0)
    k_param, k_x = jax.random.split(key)
    params, e_size = make_params(k_param, input_size, hidden_size, output_size,
                                 e_prop, alpha_values)

    x = jax.random.normal(k_x, (seq_len, batch, input_size), jnp.float32)

    out, rnn_output = aseirnn_forward(x, params, e_size, time_chunk=16)
    out = jax.block_until_ready(out)
    rnn_output = jax.block_until_ready(rnn_output)

    out_ref, rnn_ref = aseirnn_reference(x, params, e_size)
    np.testing.assert_allclose(np.asarray(out), np.asarray(out_ref),
                               rtol=1e-5, atol=1e-5)
    np.testing.assert_allclose(np.asarray(rnn_output), np.asarray(rnn_ref),
                               rtol=1e-5, atol=1e-5)

    print("KERNEL_OK")
</pallas_src>

<mosaic_0001>
module attributes {stable_mosaic.version = 11 : i64} {
  func.func @_aseirnn_kernel(%arg0: i32, %arg1: i32, %arg2: memref<8x8x128xf32, #tpu.memory_space<vmem>>, %arg3: memref<128x128xf32, #tpu.memory_space<vmem>>, %arg4: memref<128x128xf32, #tpu.memory_space<vmem>>, %arg5: memref<1x128xf32, #tpu.memory_space<vmem>>, %arg6: memref<1x128xf32, #tpu.memory_space<vmem>>, %arg7: memref<1x128xf32, #tpu.memory_space<vmem>>, %arg8: memref<1x128xf32, #tpu.memory_space<vmem>>, %arg9: memref<1x128xf32, #tpu.memory_space<vmem>>, %arg10: memref<8x8x128xf32, #tpu.memory_space<vmem>>, %arg11: memref<8x8x128xf32, #tpu.memory_space<vmem>>, %arg12: memref<8x128xf32, #tpu.memory_space<vmem>>, %arg13: memref<8x128xf32, #tpu.memory_space<vmem>>, %arg14: memref<8x128xf32, #tpu.memory_space<vmem>>) attributes {dimension_semantics = [#tpu.dimension_semantics<parallel>, #tpu.dimension_semantics<arbitrary>], iteration_bounds = array<i64: 1, 1>, scalar_prefetch = 0 : i64, scratch_operands = 4 : i64, tpu.core_type = #tpu.core_type<tc>, window_params = [{transform_indices = @transform_0, window_bounds = array<i64: 8, 8, 128>}, {pipeline_mode = #tpu.pipeline_mode<synchronous>, transform_indices = @transform_1, window_bounds = array<i64: 128, 128>}, {pipeline_mode = #tpu.pipeline_mode<synchronous>, transform_indices = @transform_2, window_bounds = array<i64: 128, 128>}, {pipeline_mode = #tpu.pipeline_mode<synchronous>, transform_indices = @transform_3, window_bounds = array<i64: 1, 128>}, {pipeline_mode = #tpu.pipeline_mode<synchronous>, transform_indices = @transform_4, window_bounds = array<i64: 1, 128>}, {pipeline_mode = #tpu.pipeline_mode<synchronous>, transform_indices = @transform_5, window_bounds = array<i64: 1, 128>}, {pipeline_mode = #tpu.pipeline_mode<synchronous>, transform_indices = @transform_6, window_bounds = array<i64: 1, 128>}, {pipeline_mode = #tpu.pipeline_mode<synchronous>, transform_indices = @transform_7, window_bounds = array<i64: 1, 128>}, {transform_indices = @transform_8, window_bounds = array<i64: 8, 8, 128>}]} {
    %c0_i32 = arith.constant 0 : i32
    %0 = arith.cmpi eq, %arg1, %c0_i32 : i32
    %1 = arith.extui %0 : i1 to i32
    %c0_i32_0 = arith.constant 0 : i32
    %2 = arith.cmpi ne, %1, %c0_i32_0 : i32
    scf.if %2 {
      %cst_73 = arith.constant 0.000000e+00 : f32
      %167 = vector.broadcast %cst_73 : f32 to vector<8x128xf32>
      %c0_74 = arith.constant 0 : index
      %c0_75 = arith.constant 0 : index
      %168 = vector.load %arg12[%c0_74, %c0_75] : memref<8x128xf32, #tpu.memory_space<vmem>>, vector<8x128xf32>
      tpu.vector_store %arg12[%c0_74, %c0_75], %167 {strides = array<i32>} : memref<8x128xf32, #tpu.memory_space<vmem>>, vector<8x128xf32>,
      %cst_76 = arith.constant 0.000000e+00 : f32
      %169 = vector.broadcast %cst_76 : f32 to vector<8x128xf32>
      %c0_77 = arith.constant 0 : index
      %c0_78 = arith.constant 0 : index
      %170 = vector.load %arg13[%c0_77, %c0_78] : memref<8x128xf32, #tpu.memory_space<vmem>>, vector<8x128xf32>
      tpu.vector_store %arg13[%c0_77, %c0_78], %169 {strides = array<i32>} : memref<8x128xf32, #tpu.memory_space<vmem>>, vector<8x128xf32>,
      %cst_79 = arith.constant 0.000000e+00 : f32
      %171 = vector.broadcast %cst_79 : f32 to vector<8x128xf32>
      %c0_80 = arith.constant 0 : index
      %c0_81 = arith.constant 0 : index
      %172 = vector.load %arg14[%c0_80, %c0_81] : memref<8x128xf32, #tpu.memory_space<vmem>>, vector<8x128xf32>
      tpu.vector_store %arg14[%c0_80, %c0_81], %171 {strides = array<i32>} : memref<8x128xf32, #tpu.memory_space<vmem>>, vector<8x128xf32>,
    } else {
    }
    %c0 = arith.constant 0 : index
    %c0_1 = arith.constant 0 : index
    %3 = vector.load %arg3[%c0, %c0_1] : memref<128x128xf32, #tpu.memory_space<vmem>>, vector<128x128xf32>
    %c0_2 = arith.constant 0 : index
    %c0_3 = arith.constant 0 : index
    %c0_4 = arith.constant 0 : index
    %4 = vector.load %arg2[%c0_2, %c0_3, %c0_4] : memref<8x8x128xf32, #tpu.memory_space<vmem>>, vector<8x8x128xf32>
    %5 = vector.shape_cast %4 : vector<8x8x128xf32> to vector<64x128xf32>
    %cst = arith.constant dense<0.000000e+00> : vector<64x128xf32>
    %6 = tpu.matmul %5, %3, %cst {dimension_numbers = #tpu.dot_dimension_numbers<[1], [0], [0], [1], [0, 0, 1, 1], [], []>} : vector<64x128xf32>, vector<128x128xf32>, vector<64x128xf32> -> vector<64x128xf32>
    %c0_5 = arith.constant 0 : index
    %c0_6 = arith.constant 0 : index
    %7 = vector.load %arg5[%c0_5, %c0_6] : memref<1x128xf32, #tpu.memory_space<vmem>>, vector<1x128xf32>
    %8 = vector.broadcast %7 : vector<1x128xf32> to vector<64x128xf32>
    %9 = arith.addf %6, %8 : vector<64x128xf32>
    %10 = vector.shape_cast %9 : vector<64x128xf32> to vector<8x8x128xf32>
    %c0_7 = arith.constant 0 : index
    %c0_8 = arith.constant 0 : index
    %c0_9 = arith.constant 0 : index
    %11 = vector.load %arg11[%c0_7, %c0_8, %c0_9] : memref<8x8x128xf32, #tpu.memory_space<vmem>>, vector<8x8x128xf32>
    tpu.vector_store %arg11[%c0_7, %c0_8, %c0_9], %10 {strides = array<i32>} : memref<8x8x128xf32, #tpu.memory_space<vmem>>, vector<8x8x128xf32>,
    %c0_10 = arith.constant 0 : index
    %c0_11 = arith.constant 0 : index
    %12 = vector.load %arg4[%c0_10, %c0_11] : memref<128x128xf32, #tpu.memory_space<vmem>>, vector<128x128xf32>
    %c0_12 = arith.constant 0 : index
    %c0_13 = arith.constant 0 : index
    %13 = vector.load %arg6[%c0_12, %c0_13] : memref<1x128xf32, #tpu.memory_space<vmem>>, vector<1x128xf32>
    %14 = vector.shape_cast %13 : vector<1x128xf32> to vector<1x128xf32>
    %15 = vector.broadcast %14 : vector<1x128xf32> to vector<8x128xf32>
    %c0_14 = arith.constant 0 : index
    %c0_15 = arith.constant 0 : index
    %16 = vector.load %arg7[%c0_14, %c0_15] : memref<1x128xf32, #tpu.memory_space<vmem>>, vector<1x128xf32>
    %17 = vector.shape_cast %16 : vector<1x128xf32> to vector<1x128xf32>
    %18 = vector.broadcast %17 : vector<1x128xf32> to vector<8x128xf32>
    %c0_16 = arith.constant 0 : index
    %c0_17 = arith.constant 0 : index
    %19 = vector.load %arg8[%c0_16, %c0_17] : memref<1x128xf32, #tpu.memory_space<vmem>>, vector<1x128xf32>
    %20 = vector.shape_cast %19 : vector<1x128xf32> to vector<1x128xf32>
    %21 = vector.broadcast %20 : vector<1x128xf32> to vector<8x128xf32>
    %c0_18 = arith.constant 0 : index
    %c0_19 = arith.constant 0 : index
    %22 = vector.load %arg9[%c0_18, %c0_19] : memref<1x128xf32, #tpu.memory_space<vmem>>, vector<1x128xf32>
    %23 = vector.shape_cast %22 : vector<1x128xf32> to vector<1x128xf32>
    %24 = vector.broadcast %23 : vector<1x128xf32> to vector<8x128xf32>
    %c0_20 = arith.constant 0 : index
    %c0_21 = arith.constant 0 : index
    %25 = vector.load %arg13[%c0_20, %c0_21] : memref<8x128xf32, #tpu.memory_space<vmem>>, vector<8x128xf32>
    %c0_22 = arith.constant 0 : index
    %c0_23 = arith.constant 0 : index
    %26 = vector.load %arg12[%c0_22, %c0_23] : memref<8x128xf32, #tpu.memory_space<vmem>>, vector<8x128xf32>
    %c0_24 = arith.constant 0 : index
    %c0_25 = arith.constant 0 : index
    %27 = vector.load %arg14[%c0_24, %c0_25] : memref<8x128xf32, #tpu.memory_space<vmem>>, vector<8x128xf32>
    %c0_i32_26 = arith.constant 0 : i32
    %cst_27 = arith.constant dense<0.000000e+00> : vector<8x128xf32>
    %28 = tpu.matmul %26, %12, %cst_27 {dimension_numbers = #tpu.dot_dimension_numbers<[1], [0], [0], [1], [0, 0, 1, 1], [], []>} : vector<8x128xf32>, vector<128x128xf32>, vector<8x128xf32> -> vector<8x128xf32>
    %29 = arith.index_cast %c0_i32_26 : i32 to index
    %c0_28 = arith.constant 0 : index
    %c0_29 = arith.constant 0 : index
    %30 = vector.load %arg11[%29, %c0_28, %c0_29] : memref<8x8x128xf32, #tpu.memory_space<vmem>>, vector<1x8x128xf32>
    %31 = vector.shape_cast %30 : vector<1x8x128xf32> to vector<8x128xf32>
    %32 = arith.addf %28, %31 : vector<8x128xf32>
    %33 = arith.mulf %21, %32 : vector<8x128xf32>
    %34 = arith.mulf %24, %27 : vector<8x128xf32>
    %35 = arith.addf %33, %34 : vector<8x128xf32>
    %36 = math.tanh %35 : vector<8x128xf32>
    %37 = arith.mulf %15, %36 : vector<8x128xf32>
    %38 = arith.mulf %18, %25 : vector<8x128xf32>
    %39 = arith.addf %37, %38 : vector<8x128xf32>
    %40 = math.tanh %39 : vector<8x128xf32>
    %41 = arith.index_cast %c0_i32_26 : i32 to index
    %c0_30 = arith.constant 0 : index
    %c0_31 = arith.constant 0 : index
    %42 = vector.load %arg10[%41, %c0_30, %c0_31] : memref<8x8x128xf32, #tpu.memory_space<vmem>>, vector<1x8x128xf32>
    %43 = vector.shape_cast %42 : vector<1x8x128xf32> to vector<8x128xf32>
    %44 = vector.shape_cast %40 : vector<8x128xf32> to vector<1x8x128xf32>
    tpu.vector_store %arg10[%41, %c0_30, %c0_31], %44 {strides = array<i32>} : memref<8x8x128xf32, #tpu.memory_space<vmem>>, vector<1x8x128xf32>,
    %c1_i32 = arith.constant 1 : i32
    %cst_32 = arith.constant dense<0.000000e+00> : vector<8x128xf32>
    %45 = tpu.matmul %40, %12, %cst_32 {dimension_numbers = #tpu.dot_dimension_numbers<[1], [0], [0], [1], [0, 0, 1, 1], [], []>} : vector<8x128xf32>, vector<128x128xf32>, vector<8x128xf32> -> vector<8x128xf32>
    %46 = arith.index_cast %c1_i32 : i32 to index
    %c0_33 = arith.constant 0 : index
    %c0_34 = arith.constant 0 : index
    %47 = vector.load %arg11[%46, %c0_33, %c0_34] : memref<8x8x128xf32, #tpu.memory_space<vmem>>, vector<1x8x128xf32>
    %48 = vector.shape_cast %47 : vector<1x8x128xf32> to vector<8x128xf32>
    %49 = arith.addf %45, %48 : vector<8x128xf32>
    %50 = arith.mulf %21, %49 : vector<8x128xf32>
    %51 = arith.mulf %24, %35 : vector<8x128xf32>
    %52 = arith.addf %50, %51 : vector<8x128xf32>
    %53 = math.tanh %52 : vector<8x128xf32>
    %54 = arith.mulf %15, %53 : vector<8x128xf32>
    %55 = arith.mulf %18, %39 : vector<8x128xf32>
    %56 = arith.addf %54, %55 : vector<8x128xf32>
    %57 = math.tanh %56 : vector<8x128xf32>
    %58 = arith.index_cast %c1_i32 : i32 to index
    %c0_35 = arith.constant 0 : index
    %c0_36 = arith.constant 0 : index
    %59 = vector.load %arg10[%58, %c0_35, %c0_36] : memref<8x8x128xf32, #tpu.memory_space<vmem>>, vector<1x8x128xf32>
    %60 = vector.shape_cast %59 : vector<1x8x128xf32> to vector<8x128xf32>
    %61 = vector.shape_cast %57 : vector<8x128xf32> to vector<1x8x128xf32>
    tpu.vector_store %arg10[%58, %c0_35, %c0_36], %61 {strides = array<i32>} : memref<8x8x128xf32, #tpu.memory_space<vmem>>, vector<1x8x128xf32>,
    %c2_i32 = arith.constant 2 : i32
    %cst_37 = arith.constant dense<0.000000e+00> : vector<8x128xf32>
    %62 = tpu.matmul %57, %12, %cst_37 {dimension_numbers = #tpu.dot_dimension_numbers<[1], [0], [0], [1], [0, 0, 1, 1], [], []>} : vector<8x128xf32>, vector<128x128xf32>, vector<8x128xf32> -> vector<8x128xf32>
    %63 = arith.index_cast %c2_i32 : i32 to index
    %c0_38 = arith.constant 0 : index
    %c0_39 = arith.constant 0 : index
    %64 = vector.load %arg11[%63, %c0_38, %c0_39] : memref<8x8x128xf32, #tpu.memory_space<vmem>>, vector<1x8x128xf32>
    %65 = vector.shape_cast %64 : vector<1x8x128xf32> to vector<8x128xf32>
    %66 = arith.addf %62, %65 : vector<8x128xf32>
    %67 = arith.mulf %21, %66 : vector<8x128xf32>
    %68 = arith.mulf %24, %52 : vector<8x128xf32>
    %69 = arith.addf %67, %68 : vector<8x128xf32>
    %70 = math.tanh %69 : vector<8x128xf32>
    %71 = arith.mulf %15, %70 : vector<8x128xf32>
    %72 = arith.mulf %18, %56 : vector<8x128xf32>
    %73 = arith.addf %71, %72 : vector<8x128xf32>
    %74 = math.tanh %73 : vector<8x128xf32>
    %75 = arith.index_cast %c2_i32 : i32 to index
    %c0_40 = arith.constant 0 : index
    %c0_41 = arith.constant 0 : index
    %76 = vector.load %arg10[%75, %c0_40, %c0_41] : memref<8x8x128xf32, #tpu.memory_space<vmem>>, vector<1x8x128xf32>
    %77 = vector.shape_cast %76 : vector<1x8x128xf32> to vector<8x128xf32>
    %78 = vector.shape_cast %74 : vector<8x128xf32> to vector<1x8x128xf32>
    tpu.vector_store %arg10[%75, %c0_40, %c0_41], %78 {strides = array<i32>} : memref<8x8x128xf32, #tpu.memory_space<vmem>>, vector<1x8x128xf32>,
    %c3_i32 = arith.constant 3 : i32
    %cst_42 = arith.constant dense<0.000000e+00> : vector<8x128xf32>
    %79 = tpu.matmul %74, %12, %cst_42 {dimension_numbers = #tpu.dot_dimension_numbers<[1], [0], [0], [1], [0, 0, 1, 1], [], []>} : vector<8x128xf32>, vector<128x128xf32>, vector<8x128xf32> -> vector<8x128xf32>
    %80 = arith.index_cast %c3_i32 : i32 to index
    %c0_43 = arith.constant 0 : index
    %c0_44 = arith.constant 0 : index
    %81 = vector.load %arg11[%80, %c0_43, %c0_44] : memref<8x8x128xf32, #tpu.memory_space<vmem>>, vector<1x8x128xf32>
    %82 = vector.shape_cast %81 : vector<1x8x128xf32> to vector<8x128xf32>
    %83 = arith.addf %79, %82 : vector<8x128xf32>
    %84 = arith.mulf %21, %83 : vector<8x128xf32>
    %85 = arith.mulf %24, %69 : vector<8x128xf32>
    %86 = arith.addf %84, %85 : vector<8x128xf32>
    %87 = math.tanh %86 : vector<8x128xf32>
    %88 = arith.mulf %15, %87 : vector<8x128xf32>
    %89 = arith.mulf %18, %73 : vector<8x128xf32>
    %90 = arith.addf %88, %89 : vector<8x128xf32>
    %91 = math.tanh %90 : vector<8x128xf32>
    %92 = arith.index_cast %c3_i32 : i32 to index
    %c0_45 = arith.constant 0 : index
    %c0_46 = arith.constant 0 : index
    %93 = vector.load %arg10[%92, %c0_45, %c0_46] : memref<8x8x128xf32, #tpu.memory_space<vmem>>, vector<1x8x128xf32>
    %94 = vector.shape_cast %93 : vector<1x8x128xf32> to vector<8x128xf32>
    %95 = vector.shape_cast %91 : vector<8x128xf32> to vector<1x8x128xf32>
    tpu.vector_store %arg10[%92, %c0_45, %c0_46], %95 {strides = array<i32>} : memref<8x8x128xf32, #tpu.memory_space<vmem>>, vector<1x8x128xf32>,
    %c4_i32 = arith.constant 4 : i32
    %cst_47 = arith.constant dense<0.000000e+00> : vector<8x128xf32>
    %96 = tpu.matmul %91, %12, %cst_47 {dimension_numbers = #tpu.dot_dimension_numbers<[1], [0], [0], [1], [0, 0, 1, 1], [], []>} : vector<8x128xf32>, vector<128x128xf32>, vector<8x128xf32> -> vector<8x128xf32>
    %97 = arith.index_cast %c4_i32 : i32 to index
    %c0_48 = arith.constant 0 : index
    %c0_49 = arith.constant 0 : index
    %98 = vector.load %arg11[%97, %c0_48, %c0_49] : memref<8x8x128xf32, #tpu.memory_space<vmem>>, vector<1x8x128xf32>
    %99 = vector.shape_cast %98 : vector<1x8x128xf32> to vector<8x128xf32>
    %100 = arith.addf %96, %99 : vector<8x128xf32>
    %101 = arith.mulf %21, %100 : vector<8x128xf32>
    %102 = arith.mulf %24, %86 : vector<8x128xf32>
    %103 = arith.addf %101, %102 : vector<8x128xf32>
    %104 = math.tanh %103 : vector<8x128xf32>
    %105 = arith.mulf %15, %104 : vector<8x128xf32>
    %106 = arith.mulf %18, %90 : vector<8x128xf32>
    %107 = arith.addf %105, %106 : vector<8x128xf32>
    %108 = math.tanh %107 : vector<8x128xf32>
    %109 = arith.index_cast %c4_i32 : i32 to index
    %c0_50 = arith.constant 0 : index
    %c0_51 = arith.constant 0 : index
    %110 = vector.load %arg10[%109, %c0_50, %c0_51] : memref<8x8x128xf32, #tpu.memory_space<vmem>>, vector<1x8x128xf32>
    %111 = vector.shape_cast %110 : vector<1x8x128xf32> to vector<8x128xf32>
    %112 = vector.shape_cast %108 : vector<8x128xf32> to vector<1x8x128xf32>
    tpu.vector_store %arg10[%109, %c0_50, %c0_51], %112 {strides = array<i32>} : memref<8x8x128xf32, #tpu.memory_space<vmem>>, vector<1x8x128xf32>,
    %c5_i32 = arith.constant 5 : i32
    %cst_52 = arith.constant dense<0.000000e+00> : vector<8x128xf32>
    %113 = tpu.matmul %108, %12, %cst_52 {dimension_numbers = #tpu.dot_dimension_numbers<[1], [0], [0], [1], [0, 0, 1, 1], [], []>} : vector<8x128xf32>, vector<128x128xf32>, vector<8x128xf32> -> vector<8x128xf32>
    %114 = arith.index_cast %c5_i32 : i32 to index
    %c0_53 = arith.constant 0 : index
    %c0_54 = arith.constant 0 : index
    %115 = vector.load %arg11[%114, %c0_53, %c0_54] : memref<8x8x128xf32, #tpu.memory_space<vmem>>, vector<1x8x128xf32>
    %116 = vector.shape_cast %115 : vector<1x8x128xf32> to vector<8x128xf32>
    %117 = arith.addf %113, %116 : vector<8x128xf32>
    %118 = arith.mulf %21, %117 : vector<8x128xf32>
    %119 = arith.mulf %24, %103 : vector<8x128xf32>
    %120 = arith.addf %118, %119 : vector<8x128xf32>
    %121 = math.tanh %120 : vector<8x128xf32>
    %122 = arith.mulf %15, %121 : vector<8x128xf32>
    %123 = arith.mulf %18, %107 : vector<8x128xf32>
    %124 = arith.addf %122, %123 : vector<8x128xf32>
    %125 = math.tanh %124 : vector<8x128xf32>
    %126 = arith.index_cast %c5_i32 : i32 to index
    %c0_55 = arith.constant 0 : index
    %c0_56 = arith.constant 0 : index
    %127 = vector.load %arg10[%126, %c0_55, %c0_56] : memref<8x8x128xf32, #tpu.memory_space<vmem>>, vector<1x8x128xf32>
    %128 = vector.shape_cast %127 : vector<1x8x128xf32> to vector<8x128xf32>
    %129 = vector.shape_cast %125 : vector<8x128xf32> to vector<1x8x128xf32>
    tpu.vector_store %arg10[%126, %c0_55, %c0_56], %129 {strides = array<i32>} : memref<8x8x128xf32, #tpu.memory_space<vmem>>, vector<1x8x128xf32>,
    %c6_i32 = arith.constant 6 : i32
    %cst_57 = arith.constant dense<0.000000e+00> : vector<8x128xf32>
    %130 = tpu.matmul %125, %12, %cst_57 {dimension_numbers = #tpu.dot_dimension_numbers<[1], [0], [0], [1], [0, 0, 1, 1], [], []>} : vector<8x128xf32>, vector<128x128xf32>, vector<8x128xf32> -> vector<8x128xf32>
    %131 = arith.index_cast %c6_i32 : i32 to index
    %c0_58 = arith.constant 0 : index
    %c0_59 = arith.constant 0 : index
    %132 = vector.load %arg11[%131, %c0_58, %c0_59] : memref<8x8x128xf32, #tpu.memory_space<vmem>>, vector<1x8x128xf32>
    %133 = vector.shape_cast %132 : vector<1x8x128xf32> to vector<8x128xf32>
    %134 = arith.addf %130, %133 : vector<8x128xf32>
    %135 = arith.mulf %21, %134 : vector<8x128xf32>
    %136 = arith.mulf %24, %120 : vector<8x128xf32>
    %137 = arith.addf %135, %136 : vector<8x128xf32>
    %138 = math.tanh %137 : vector<8x128xf32>
    %139 = arith.mulf %15, %138 : vector<8x128xf32>
    %140 = arith.mulf %18, %124 : vector<8x128xf32>
    %141 = arith.addf %139, %140 : vector<8x128xf32>
    %142 = math.tanh %141 : vector<8x128xf32>
    %143 = arith.index_cast %c6_i32 : i32 to index
    %c0_60 = arith.constant 0 : index
    %c0_61 = arith.constant 0 : index
    %144 = vector.load %arg10[%143, %c0_60, %c0_61] : memref<8x8x128xf32, #tpu.memory_space<vmem>>, vector<1x8x128xf32>
    %145 = vector.shape_cast %144 : vector<1x8x128xf32> to vector<8x128xf32>
    %146 = vector.shape_cast %142 : vector<8x128xf32> to vector<1x8x128xf32>
    tpu.vector_store %arg10[%143, %c0_60, %c0_61], %146 {strides = array<i32>} : memref<8x8x128xf32, #tpu.memory_space<vmem>>, vector<1x8x128xf32>,
    %c7_i32 = arith.constant 7 : i32
    %cst_62 = arith.constant dense<0.000000e+00> : vector<8x128xf32>
    %147 = tpu.matmul %142, %12, %cst_62 {dimension_numbers = #tpu.dot_dimension_numbers<[1], [0], [0], [1], [0, 0, 1, 1], [], []>} : vector<8x128xf32>, vector<128x128xf32>, vector<8x128xf32> -> vector<8x128xf32>
    %148 = arith.index_cast %c7_i32 : i32 to index
    %c0_63 = arith.constant 0 : index
    %c0_64 = arith.constant 0 : index
    %149 = vector.load %arg11[%148, %c0_63, %c0_64] : memref<8x8x128xf32, #tpu.memory_space<vmem>>, vector<1x8x128xf32>
    %150 = vector.shape_cast %149 : vector<1x8x128xf32> to vector<8x128xf32>
    %151 = arith.addf %147, %150 : vector<8x128xf32>
    %152 = arith.mulf %21, %151 : vector<8x128xf32>
    %153 = arith.mulf %24, %137 : vector<8x128xf32>
    %154 = arith.addf %152, %153 : vector<8x128xf32>
    %155 = math.tanh %154 : vector<8x128xf32>
    %156 = arith.mulf %15, %155 : vector<8x128xf32>
    %157 = arith.mulf %18, %141 : vector<8x128xf32>
    %158 = arith.addf %156, %157 : vector<8x128xf32>
    %159 = math.tanh %158 : vector<8x128xf32>
    %160 = arith.index_cast %c7_i32 : i32 to index
    %c0_65 = arith.constant 0 : index
    %c0_66 = arith.constant 0 : index
    %161 = vector.load %arg10[%160, %c0_65, %c0_66] : memref<8x8x128xf32, #tpu.memory_space<vmem>>, vector<1x8x128xf32>
    %162 = vector.shape_cast %161 : vector<1x8x128xf32> to vector<8x128xf32>
    %163 = vector.shape_cast %159 : vector<8x128xf32> to vector<1x8x128xf32>
    tpu.vector_store %arg10[%160, %c0_65, %c0_66], %163 {strides = array<i32>} : memref<8x8x128xf32, #tpu.memory_space<vmem>>, vector<1x8x128xf32>,
    %c8_i32 = arith.constant 8 : i32
    %c0_67 = arith.constant 0 : index
    %c0_68 = arith.constant 0 : index
    %164 = vector.load %arg13[%c0_67, %c0_68] : memref<8x128xf32, #tpu.memory_space<vmem>>, vector<8x128xf32>
    tpu.vector_store %arg13[%c0_67, %c0_68], %158 {strides = array<i32>} : memref<8x128xf32, #tpu.memory_space<vmem>>, vector<8x128xf32>,
    %c0_69 = arith.constant 0 : index
    %c0_70 = arith.constant 0 : index
    %165 = vector.load %arg12[%c0_69, %c0_70] : memref<8x128xf32, #tpu.memory_space<vmem>>, vector<8x128xf32>
    tpu.vector_store %arg12[%c0_69, %c0_70], %159 {strides = array<i32>} : memref<8x128xf32, #tpu.memory_space<vmem>>, vector<8x128xf32>,
    %c0_71 = arith.constant 0 : index
    %c0_72 = arith.constant 0 : index
    %166 = vector.load %arg14[%c0_71, %c0_72] : memref<8x128xf32, #tpu.memory_space<vmem>>, vector<8x128xf32>
    tpu.vector_store %arg14[%c0_71, %c0_72], %154 {strides = array<i32>} : memref<8x128xf32, #tpu.memory_space<vmem>>, vector<8x128xf32>,
    return
  }
  func.func @transform_0(%arg0: i32, %arg1: i32) -> (i32, i32, i32) {
    %c0_i32 = arith.constant 0 : i32
    %c0_i32_0 = arith.constant 0 : i32
    return %arg1, %arg0, %c0_i32 : i32, i32, i32
  }
  func.func @transform_1(%arg0: i32, %arg1: i32) -> (i32, i32) {
    %c0_i32 = arith.constant 0 : i32
    %c0_i32_0 = arith.constant 0 : i32
    %c0_i32_1 = arith.constant 0 : i32
    return %c0_i32, %c0_i32_0 : i32, i32
  }
  func.func @transform_2(%arg0: i32, %arg1: i32) -> (i32, i32) {
    %c0_i32 = arith.constant 0 : i32
    %c0_i32_0 = arith.constant 0 : i32
    %c0_i32_1 = arith.constant 0 : i32
    return %c0_i32, %c0_i32_0 : i32, i32
  }
  func.func @transform_3(%arg0: i32, %arg1: i32) -> (i32, i32) {
    %c0_i32 = arith.constant 0 : i32
    %c0_i32_0 = arith.constant 0 : i32
    %c0_i32_1 = arith.constant 0 : i32
    return %c0_i32, %c0_i32_0 : i32, i32
  }
  func.func @transform_4(%arg0: i32, %arg1: i32) -> (i32, i32) {
    %c0_i32 = arith.constant 0 : i32
    %c0_i32_0 = arith.constant 0 : i32
    %c0_i32_1 = arith.constant 0 : i32
    return %c0_i32, %c0_i32_0 : i32, i32
  }
  func.func @transform_5(%arg0: i32, %arg1: i32) -> (i32, i32) {
    %c0_i32 = arith.constant 0 : i32
    %c0_i32_0 = arith.constant 0 : i32
    %c0_i32_1 = arith.constant 0 : i32
    return %c0_i32, %c0_i32_0 : i32, i32
  }
  func.func @transform_6(%arg0: i32, %arg1: i32) -> (i32, i32) {
    %c0_i32 = arith.constant 0 : i32
    %c0_i32_0 = arith.constant 0 : i32
    %c0_i32_1 = arith.constant 0 : i32
    return %c0_i32, %c0_i32_0 : i32, i32
  }
  func.func @transform_7(%arg0: i32, %arg1: i32) -> (i32, i32) {
    %c0_i32 = arith.constant 0 : i32
    %c0_i32_0 = arith.constant 0 : i32
    %c0_i32_1 = arith.constant 0 : i32
    return %c0_i32, %c0_i32_0 : i32, i32
  }
  func.func @transform_8(%arg0: i32, %arg1: i32) -> (i32, i32, i32) {
    %c0_i32 = arith.constant 0 : i32
    %c0_i32_0 = arith.constant 0 : i32
    return %arg1, %arg0, %c0_i32 : i32, i32, i32
  }
}

</mosaic_0001>

<bundles_post_ra>
// kernel: tpu_custom_call.1
= control target key start
LH: loop header
LB: loop body
LE: loop exit
PB: predicated region body
PF: predicated region fallthrough
CT: control target
= control target key end

     0   :  { %13 = vsyncpa [#allocation7], 0  ;;  %s2154_s0 = inlined_call_operand.hbm [shape: f32[8,8,128], index: 0, kind: input, shape index: {}]   ;;  %s2155_s1 = inlined_call_operand.hbm [shape: f32[128,128], index: 1, kind: input, shape index: {}]   ;;  %s2156_s2 = inlined_call_operand.hbm [shape: f32[128,128], index: 2, kind: input, shape index: {}]   ;;  %s2157_s3 = inlined_call_operand.vmem [shape: f32[1,128], index: 3, kind: input, shape index: {}]   ;;  %s2158_s4 = inlined_call_operand.vmem [shape: f32[1,128], index: 4, kind: input, shape index: {}]   ;;  %s2159_s5 = inlined_call_operand.vmem [shape: f32[1,128], index: 5, kind: input, shape index: {}]   ;;  %s2160_s6 = inlined_call_operand.vmem [shape: f32[1,128], index: 6, kind: input, shape index: {}]   ;;  %s2161_s7 = inlined_call_operand.vmem [shape: f32[1,128], index: 7, kind: input, shape index: {}]   ;;  %s2162_s8 = inlined_call_operand.hbm [shape: f32[8,8,128], index: 8, kind: output, shape index: {}]  }
   0x1   :  { %14 = vsyncpa [#allocation10], 0 }
   0x2   :  { %15 = vsyncpa [#allocation8], 0  ;;  %s1792_s27 = smov [#allocation9]   ;;  %s1793_s29 = smov [#allocation6]  }
   0x3   :  { %s33_s28 = sshll.u32 %s1792_s27, 4  ;;  %s21_s30 = sshll.u32 %s1793_s29, 4  ;;  %s34_s28 = int_to_ptr.vmem [resolvable:$true] %s33_s28  ;;  %s1846_s30 = int_to_ptr.vmem [resolvable:$true] %s21_s30 }
   0x4   :  { %s1698_s11 = scalar_lea.hbm %s2155_s1, 2048 }
   0x5   :  { %p1699_p0 = scmp.ne.s32.totalorder %s2155_s1, %s1698_s11  ;;  %p1702_p1 = scmp.lt.u32.totalorder %s1698_s11, %s2155_s1 }
   0x7   :  { %p1704_p2 = pnand %p1702_p1, %p1699_p0 }
   0x9   :  { %1707 = shalt.err (!%p1704_p2)
}
   0xa   :  { %s1708_s16 = scalar_lea.vmem %s34_s28, 2048  ;;  %p1713_p4 = scmp.lt.s32.totalorder %s34_s28, %s34_s28 }
   0xb   :  { %p1709_p3 = scmp.ne.s32.totalorder %s34_s28, %s1708_s16  ;;  %p1714_p5 = scmp.lt.s32.totalorder %s1708_s16, %s1708_s16 }
   0xd   :  { %p1715_p6 = por %p1714_p5, %p1713_p4 }
   0xf   :  { %p1716_p7 = pnand %p1715_p6, %p1709_p3 }
  0x11   :  { %1719 = shalt.err (!%p1716_p7)
}
  0x12   :  { %s1794_s17 = smov 128   ;;  %s1795_s18 = smov 8  }
  0x13   :  { %39 = dma.hbm_to_vmem [thread:$0]  %s2155_s1, 2048, %s34_s28, [#allocation10], %s1794_s17, %s1794_s17, %s1795_s18  }
  0x14   :  { %s1720_s23 = scalar_lea.hbm %s2154_s0, 1024 }
  0x15   :  { %p1721_p8 = scmp.ne.s32.totalorder %s2154_s0, %s1720_s23  ;;  %p1724_p9 = scmp.lt.u32.totalorder %s1720_s23, %s2154_s0 }
  0x17   :  { %p1726_p10 = pnand %p1724_p9, %p1721_p8 }
  0x19   :  { %1729 = shalt.err (!%p1726_p10)
}
  0x1a   :  { %s1730_s29 = scalar_lea.vmem %s1846_s30, 1024  ;;  %p1735_p12 = scmp.lt.s32.totalorder %s1846_s30, %s1846_s30 }
  0x1b   :  { %p1731_p11 = scmp.ne.s32.totalorder %s1846_s30, %s1730_s29  ;;  %p1736_p13 = scmp.lt.s32.totalorder %s1730_s29, %s1730_s29 }
  0x1d   :  { %p1737_p0 = por %p1736_p13, %p1735_p12 }
  0x1f   :  { %p1738_p1 = pnand %p1737_p0, %p1731_p11 }
  0x21   :  { %1741 = shalt.err (!%p1738_p1)
}
  0x22   :  { %27 = dma.hbm_to_vmem [thread:$0]  %s2154_s0, 1024, %s1846_s30, [#allocation7], %s1794_s17, %s1794_s17, %s1795_s18  }
  0x23   :  { %s1796_s9 = smov [#allocation11]   ;;  %s1742_s13 = scalar_lea.hbm %s2156_s2, 2048 }
  0x24   :  { %s45_s10 = sshll.u32 %s1796_s9, 4  ;;  %p1743_p2 = scmp.ne.s32.totalorder %s2156_s2, %s1742_s13  ;;  %s46_s10 = int_to_ptr.vmem [resolvable:$true] %s45_s10 }
  0x25   :  { %p1746_p3 = scmp.lt.u32.totalorder %s1742_s13, %s2156_s2 }
  0x27   :  { %p1748_p4 = pnand %p1746_p3, %p1743_p2 }
  0x29   :  { %1751 = shalt.err (!%p1748_p4)
}
  0x2a   :  { %s1752_s20 = scalar_lea.vmem %s46_s10, 2048  ;;  %p1757_p6 = scmp.lt.s32.totalorder %s46_s10, %s46_s10 }
  0x2b   :  { %p1753_p5 = scmp.ne.s32.totalorder %s46_s10, %s1752_s20  ;;  %p1758_p7 = scmp.lt.s32.totalorder %s1752_s20, %s1752_s20 }
  0x2d   :  { %p1759_p8 = por %p1758_p7, %p1757_p6 }
  0x2f   :  { %p1760_p9 = pnand %p1759_p8, %p1753_p5 }
  0x31   :  { %1763 = shalt.err (!%p1760_p9)
}
  0x32   :  { %51 = dma.hbm_to_vmem [thread:$0]  %s2156_s2, 2048, %s46_s10, [#allocation10], %s1794_s17, %s1794_s17, %s1795_s18  }
  0x33   :  { %1786 = dma.done.wait [#allocation7], 1024  }
  0x34   :  { %1787 = vsyncadd [#allocation7], 4294966272 }
  0x35   :  { %1788 = dma.done.wait [#allocation10], 4096  }
  0x36   :  { %1789 = vsyncadd [#allocation10], 4294963200  ;;  %v1797_v0 = vmov 0.0|0.0   ;;  %vm1798_vm0 = vmmov 0   ;;  %v1799_v1 = vmov 0.0   ;;  %v78_v2 = vld [vmem:[#allocation9] sm:$0xff] }
  0x37   :  { %1465 = vmatprep.subr.bf16.mxu1 %v1797_v0  ;;  %1185 = vmatprep.mubr.msk.f32.mxu1 %vm1798_vm0, %v1799_v1  ;;  %v79_v3 = vld [vmem:[#allocation9 + $0x8] sm:$0xff]  ;;  %v222_v4 = vld [vmem:[#allocation11] sm:$0xff]  ;;  %v80_v7 = vld [vmem:[#allocation9 + $0x10] sm:$0xff] }
  0x38   :  { %v1433_v5 = vpack.c.bf16 %v79_v3, %v78_v2  ;;  %v223_v6 = vld [vmem:[#allocation11 + $0x8] sm:$0xff]  ;;  %v81_v8 = vld [vmem:[#allocation9 + $0x18] sm:$0xff]  ;;  %v224_v11 = vld [vmem:[#allocation11 + $0x10] sm:$0xff] }
  0x39   :  { %v1901_v9 = vpack.c.bf16 %v223_v6, %v222_v4  ;;  %v1437_v10 = vpack.c.bf16 %v81_v8, %v80_v7  ;;  %v225_v12 = vld [vmem:[#allocation11 + $0x18] sm:$0xff]  ;;  %v82_v13 = vld [vmem:[#allocation9 + $0x20] sm:$0xff]  ;;  %v83_v14 = vld [vmem:[#allocation9 + $0x28] sm:$0xff] }
  0x3a   :  { %1434 = vmatprep.subr.bf16.mxu0 %v1433_v5  ;;  %v1904_v15 = vpack.c.bf16 %v225_v12, %v224_v11  ;;  %v1441_v16 = vpack.c.bf16 %v83_v14, %v82_v13  ;;  %v226_v17 = vld [vmem:[#allocation11 + $0x20] sm:$0xff]  ;;  %v227_v18 = vld [vmem:[#allocation11 + $0x28] sm:$0xff]  ;;  %v84_v19 = vld [vmem:[#allocation9 + $0x30] sm:$0xff] }
  0x3b   :  { %1436 = vmatpush3.bf16.msra.mxu0 %v1433_v5  ;;  %1467 = vmatpush3.bf16.msra.mxu1 %v1901_v9  ;;  %v85_v20 = vld [vmem:[#allocation9 + $0x38] sm:$0xff]  ;;  %v1908_v21 = vpack.c.bf16 %v227_v18, %v226_v17  ;;  %v228_v23 = vld [vmem:[#allocation11 + $0x30] sm:$0xff]  ;;  %v86_v25 = vld [vmem:[#allocation9 + $0x40] sm:$0xff] }
  0x3c   :  { %1438 = vmatprep.subr.bf16.mxu0 %v1437_v10  ;;  %1468 = vmatprep.subr.bf16.mxu1 %v1797_v0  ;;  %v1445_v22 = vpack.c.bf16 %v85_v20, %v84_v19  ;;  %v229_v24 = vld [vmem:[#allocation11 + $0x38] sm:$0xff]  ;;  %v87_v26 = vld [vmem:[#allocation9 + $0x48] sm:$0xff]  ;;  %v94_v27 = vld [vmem:[#allocation6] sm:$0xff] }
  0x3d   :  { %1141 = vmatprep.mubr.f32.mxu0 %v94_v27  ;;  %v1912_v28 = vpack.c.bf16 %v229_v24, %v228_v23  ;;  %v1449_v29 = vpack.c.bf16 %v87_v26, %v86_v25  ;;  %v230_v30 = vld [vmem:[#allocation11 + $0x40] sm:$0xff]  ;;  %v231_v31 = vld [vmem:[#allocation11 + $0x48] sm:$0xff]  ;;  %v88_v32 = vld [vmem:[#allocation9 + $0x50] sm:$0xff] }
  0x3e   :  { %v89_v33 = vld [vmem:[#allocation9 + $0x58] sm:$0xff]  ;;  %v1916_v34 = vpack.c.bf16 %v231_v31, %v230_v30  ;;  %v232_v36 = vld [vmem:[#allocation11 + $0x50] sm:$0xff]  ;;  %v90_v38 = vld [vmem:[#allocation9 + $0x60] sm:$0xff] }
  0x3f   :  { %1440 = vmatpush3.bf16.msra.mxu0 %v1437_v10  ;;  %1470 = vmatpush3.bf16.msra.mxu1 %v1904_v15  ;;  %v1453_v35 = vpack.c.bf16 %v89_v33, %v88_v32  ;;  %v233_v37 = vld [vmem:[#allocation11 + $0x58] sm:$0xff]  ;;  %v91_v39 = vld [vmem:[#allocation9 + $0x68] sm:$0xff]  ;;  %v234_v42 = vld [vmem:[#allocation11 + $0x60] sm:$0xff] }
  0x40   :  { %1442 = vmatprep.subr.bf16.mxu0 %v1441_v16  ;;  %1471 = vmatprep.subr.bf16.mxu1 %v1797_v0  ;;  %v1920_v40 = vpack.c.bf16 %v233_v37, %v232_v36  ;;  %v1457_v41 = vpack.c.bf16 %v91_v39, %v90_v38  ;;  %v235_v43 = vld [vmem:[#allocation11 + $0x68] sm:$0xff]  ;;  %v92_v44 = vld [vmem:[#allocation9 + $0x70] sm:$0xff]  ;;  %v93_v45 = vld [vmem:[#allocation9 + $0x78] sm:$0xff] }
  0x41   :  { %v1924_v46 = vpack.c.bf16 %v235_v43, %v234_v42  ;;  %v1461_v47 = vpack.c.bf16 %v93_v45, %v92_v44  ;;  %v236_v48 = vld [vmem:[#allocation11 + $0x70] sm:$0xff]  ;;  %v237_v49 = vld [vmem:[#allocation11 + $0x78] sm:$0xff]  ;;  %v95_v51 = vld [vmem:[#allocation6 + $0x8] sm:$0xff] }
  0x42   :  { %v1928_v50 = vpack.c.bf16 %v237_v49, %v236_v48  ;;  %v96_v52 = vld [vmem:[#allocation6 + $0x10] sm:$0xff]  ;;  %v97_v53 = vld [vmem:[#allocation6 + $0x18] sm:$0xff]  ;;  %v98_v54 = vld [vmem:[#allocation6 + $0x20] sm:$0xff] }
  0x43   :  { %1444 = vmatpush3.bf16.msra.mxu0 %v1441_v16  ;;  %1473 = vmatpush3.bf16.msra.mxu1 %v1908_v21  ;;  %v99_v55 = vld [vmem:[#allocation6 + $0x28] sm:$0xff]  ;;  %v100_v56 = vld [vmem:[#allocation6 + $0x30] sm:$0xff]  ;;  %v101_v57 = vld [vmem:[#allocation6 + $0x38] sm:$0xff] }
  0x44   :  { %1446 = vmatprep.subr.bf16.mxu0 %v1445_v22  ;;  %1474 = vmatprep.subr.bf16.mxu1 %v1797_v0  ;;  %v1974_v58 = vld [vmem:[%s2157_s3] ss:$0 sm:$0xff] }
  0x45   :  { %v1979_v62 = vld [vmem:[%s2161_s7] ss:$0 sm:$0xff] }
  0x46   :  { %v1985_v3 = vld [vmem:[%s2160_s6] ss:$0 sm:$0xff]  ;;  %v341_v5 = vmul.f32 0.0, %v1979_v62 }
  0x47   :  { %1448 = vmatpush3.bf16.msra.mxu0 %v1445_v22  ;;  %1476 = vmatpush3.bf16.msra.mxu1 %v1912_v28  ;;  %v1992_v8 = vld [vmem:[%s2159_s5] ss:$0 sm:$0xff] }
  0x48   :  { %1450 = vmatprep.subr.bf16.mxu0 %v1449_v29  ;;  %1477 = vmatprep.subr.bf16.mxu1 %v1797_v0  ;;  %v1997_v10 = vld [vmem:[%s2158_s4] ss:$0 sm:$0xff]  ;;  %v345_v11 = vmul.f32 0.0, %v1992_v8  ;;  %s1800_s4 = smov [#allocation12]  }
  0x49   :  { %s931_s5 = sshll.u32 %s1800_s4, 4  ;;  %s932_s5 = int_to_ptr.vmem [resolvable:$true] %s931_s5 }
  0x4a   :  { %s1764_s6 = scalar_lea.vmem %s932_s5, 1024  ;;  %p1769_p11 = scmp.lt.s32.totalorder %s932_s5, %s932_s5 }
  0x4b   :  { %1452 = vmatpush3.bf16.msra.mxu0 %v1449_v29  ;;  %1479 = vmatpush3.bf16.msra.mxu1 %v1916_v34  ;;  %p1765_p10 = scmp.ne.s32.totalorder %s932_s5, %s1764_s6  ;;  %p1770_p12 = scmp.lt.s32.totalorder %s1764_s6, %s1764_s6 }
  0x4c   :  { %1454 = vmatprep.subr.bf16.mxu0 %v1453_v35  ;;  %1480 = vmatprep.subr.bf16.mxu1 %v1797_v0 }
  0x4d   :  { %p1771_p13 = por %p1770_p12, %p1769_p11 }
  0x4f   :  { %1456 = vmatpush3.bf16.msra.mxu0 %v1453_v35  ;;  %1482 = vmatpush3.bf16.msra.mxu1 %v1920_v40  ;;  %p1772_p0 = pnand %p1771_p13, %p1765_p10 }
  0x50   :  { %1458 = vmatprep.subr.bf16.mxu0 %v1457_v41  ;;  %1483 = vmatprep.subr.bf16.mxu1 %v1797_v0 }
  0x53   :  { %1460 = vmatpush3.bf16.msra.mxu0 %v1457_v41  ;;  %1485 = vmatpush3.bf16.msra.mxu1 %v1924_v46 }
  0x54   :  { %1462 = vmatprep.subr.bf16.mxu0 %v1461_v47  ;;  %1486 = vmatprep.subr.bf16.mxu1 %v1797_v0 }
  0x57   :  { %1464 = vmatpush3.bf16.msra.mxu0 %v1461_v47  ;;  %1488 = vmatpush3.bf16.msra.mxu1 %v1928_v50 }
  0x58   :  { %1489 = vmatprep.subr.bf16.mxu0 %v1797_v0  ;;  %1513 = vmatprep.subr.bf16.mxu1 %v1797_v0 }
  0x5a   :  { %1142 = vmatmul.mubr.f32.vlgmr.msra.gmra.mrb[0].mxu0 %v95_v51  ;;  %1186 = vmatmul.mubr.f32.vlgmr.msra.gmra.mrb[0].mxu1 %v1799_v1 }
  0x5b   :  { %1491 = vmatpush3.bf16.msra.mxu0 %v1901_v9  ;;  %1515 = vmatpush3.bf16.msra.mxu1 %v1901_v9 }
  0x5c   :  { %1492 = vmatprep.subr.bf16.mxu0 %v1797_v0  ;;  %1516 = vmatprep.subr.bf16.mxu1 %v1797_v0 }
  0x5d   :  { %1255 = vmatprep.mubr.msk.f32.mxu1 %vm1798_vm0, %v1799_v1  ;;  %1144 = vmatprep.mubr.f32.mxu0 %v96_v52 }
  0x5e   :  { %1145 = vmatmul.mubr.f32.gmra.mrb[2].mxu0 %v97_v53 }
  0x5f   :  { %1494 = vmatpush3.bf16.msra.mxu0 %v1904_v15  ;;  %1518 = vmatpush3.bf16.msra.mxu1 %v1904_v15 }
  0x60   :  { %1495 = vmatprep.subr.bf16.mxu0 %v1797_v0  ;;  %1519 = vmatprep.subr.bf16.mxu1 %v1797_v0 }
  0x61   :  { %1147 = vmatprep.mubr.f32.mxu0 %v98_v54 }
  0x62   :  { %1148 = vmatmul.mubr.f32.gmra.mrb[4].mxu0 %v99_v55 }
  0x63   :  { %1497 = vmatpush3.bf16.msra.mxu0 %v1908_v21  ;;  %1521 = vmatpush3.bf16.msra.mxu1 %v1908_v21 }
  0x64   :  { %1498 = vmatprep.subr.bf16.mxu0 %v1797_v0  ;;  %1522 = vmatprep.subr.bf16.mxu1 %v1797_v0 }
  0x65   :  { %1150 = vmatprep.mubr.f32.mxu0 %v100_v56 }
  0x66   :  { %1151 = vmatmul.mubr.f32.gmra.mrb[6].mxu0 %v101_v57 }
  0x67   :  { %1500 = vmatpush3.bf16.msra.mxu0 %v1912_v28  ;;  %1524 = vmatpush3.bf16.msra.mxu1 %v1912_v28 }
  0x68   :  { %1501 = vmatprep.subr.bf16.mxu0 %v1797_v0  ;;  %1525 = vmatprep.subr.bf16.mxu1 %v1797_v0 }
  0x69   :  { %1220 = vmatprep.mubr.msk.f32.mxu0 %vm1798_vm0, %v1799_v1 }
  0x6b   :  { %1503 = vmatpush3.bf16.msra.mxu0 %v1916_v34  ;;  %1527 = vmatpush3.bf16.msra.mxu1 %v1916_v34 }
  0x6c   :  { %1504 = vmatprep.subr.bf16.mxu0 %v1797_v0  ;;  %1528 = vmatprep.subr.bf16.mxu1 %v1797_v0 }
  0x6f   :  { %1506 = vmatpush3.bf16.msra.mxu0 %v1920_v40  ;;  %1530 = vmatpush3.bf16.msra.mxu1 %v1920_v40 }
  0x70   :  { %1507 = vmatprep.subr.bf16.mxu0 %v1797_v0  ;;  %1531 = vmatprep.subr.bf16.mxu1 %v1797_v0 }
  0x73   :  { %1509 = vmatpush3.bf16.msra.mxu0 %v1924_v46  ;;  %1533 = vmatpush3.bf16.msra.mxu1 %v1924_v46 }
  0x74   :  { %1510 = vmatprep.subr.bf16.mxu0 %v1797_v0  ;;  %1534 = vmatprep.subr.bf16.mxu1 %v1797_v0 }
  0x77   :  { %1512 = vmatpush3.bf16.msra.mxu0 %v1928_v50  ;;  %1536 = vmatpush3.bf16.msra.mxu1 %v1928_v50 }
  0x78   :  { %1537 = vmatprep.subr.bf16.mxu0 %v1797_v0  ;;  %1561 = vmatprep.subr.bf16.mxu1 %v1797_v0 }
 0x12d   :  { %v1143_v59 = vpop.f32.mrb[0].mxu0  ;;  %v336_v60 = vpop.f32.mrb[0].mxu1 }
 0x12e   :  { %v175_v61 = vpop.f32.mrb[1].mxu0  ;;  %v1187_v63 = vpop.f32.mrb[1].mxu1  ;;  %v181_v24 = vadd.f32 %v1143_v59, %v1974_v58 }
 0x12f   :  { %v176_v2 = vadd.f32 %v1974_v58, %v175_v61 }
 0x131   :  { %v337_v4 = vadd.f32 %v336_v60, %v176_v2  ;;  %v2019_v17 = vpop.f32.mrb[2].mxu0 }
 0x132   :  { %v185_v18 = vpop.f32.mrb[3].mxu0  ;;  %v191_v53 = vadd.f32 %v2019_v17, %v1974_v58 }
 0x133   :  { %v340_v6 = vmul.f32 %v1985_v3, %v337_v4  ;;  %v186_v38 = vadd.f32 %v1974_v58, %v185_v18 }
 0x135   :  { %v342_v7 = vadd.f32 %v341_v5, %v340_v6  ;;  %v2021_v19 = vpop.f32.mrb[4].mxu0 }
 0x136   :  { %v2023_v20 = vpop.f32.mrb[5].mxu0 }
 0x137   :  { %1666 = vtanh.f32 %v342_v7  ;;  %v422_v30 = vmul.f32 %v1979_v62, %v342_v7  ;;  %v196_v6 = vadd.f32 %v1974_v58, %v2023_v20 }
 0x139   :  { %v2025_v22 = vpop.f32.mrb[6].mxu0 }
 0x13a   :  { %v2027_v23 = vpop.f32.mrb[7].mxu0 }
 0x141   :  { %v1667_v12 = vpop.eup %1666 }
 0x142   :  { %v344_v13 = vmul.f32 %v1667_v12, %v1997_v10 }
 0x144   :  { %v346_v14 = vadd.f32 %v345_v11, %v344_v13 }
 0x146   :  { %1668 = vtanh.f32 %v346_v14  ;;  %v426_v35 = vmul.f32 %v1992_v8, %v346_v14 }
 0x150   :  { %v1669_v16 = vpop.eup %1668 }
 0x151   :  { %348 = vst [vmem:[#allocation12] sm:$0xff] %v1669_v16  ;;  %1221 = vmatmul.mubr.f32.vlgmr.msra.gmra.mrb[8].mxu0 %v1669_v16 }
 0x152   :  { %1539 = vmatpush3.bf16.msra.mxu0 %v1901_v9  ;;  %1290 = vmatprep.mubr.msk.f32.mxu0 %vm1798_vm0, %v1799_v1 }
 0x153   :  { %1540 = vmatprep.subr.bf16.mxu0 %v1797_v0 }
 0x156   :  { %1542 = vmatpush3.bf16.msra.mxu0 %v1904_v15 }
 0x157   :  { %1543 = vmatprep.subr.bf16.mxu0 %v1797_v0 }
 0x15a   :  { %1545 = vmatpush3.bf16.msra.mxu0 %v1908_v21 }
 0x15b   :  { %1546 = vmatprep.subr.bf16.mxu0 %v1797_v0 }
 0x15e   :  { %1548 = vmatpush3.bf16.msra.mxu0 %v1912_v28 }
 0x15f   :  { %1549 = vmatprep.subr.bf16.mxu0 %v1797_v0 }
 0x162   :  { %1551 = vmatpush3.bf16.msra.mxu0 %v1916_v34 }
 0x163   :  { %1552 = vmatprep.subr.bf16.mxu0 %v1797_v0 }
 0x166   :  { %1554 = vmatpush3.bf16.msra.mxu0 %v1920_v40 }
 0x167   :  { %1555 = vmatprep.subr.bf16.mxu0 %v1797_v0 }
 0x16a   :  { %1557 = vmatpush3.bf16.msra.mxu0 %v1924_v46 }
 0x16b   :  { %1558 = vmatprep.subr.bf16.mxu0 %v1797_v0 }
 0x16e   :  { %1560 = vmatpush3.bf16.msra.mxu0 %v1928_v50 }
 0x16f   :  { %1585 = vmatprep.subr.bf16.mxu0 %v1797_v0 }
 0x224   :  { %v417_v25 = vpop.f32.mrb[8].mxu0 }
 0x225   :  { %v418_v26 = vadd.f32 %v417_v25, %v181_v24  ;;  %v1222_v27 = vpop.f32.mrb[9].mxu0 }
 0x227   :  { %v421_v29 = vmul.f32 %v1985_v3, %v418_v26 }
 0x229   :  { %v423_v31 = vadd.f32 %v422_v30, %v421_v29 }
 0x22b   :  { %1670 = vtanh.f32 %v423_v31  ;;  %v504_v44 = vmul.f32 %v1979_v62, %v423_v31 }
 0x235   :  { %v1671_v32 = vpop.eup %1670 }
 0x236   :  { %v425_v33 = vmul.f32 %v1671_v32, %v1997_v10 }
 0x238   :  { %v427_v36 = vadd.f32 %v426_v35, %v425_v33 }
 0x23a   :  { %1672 = vtanh.f32 %v427_v36  ;;  %v508_v49 = vmul.f32 %v1992_v8, %v427_v36 }
 0x244   :  { %v1673_v37 = vpop.eup %1672 }
 0x245   :  { %430 = vst [vmem:[#allocation12 + $0x8] sm:$0xff] %v1673_v37  ;;  %1256 = vmatmul.mubr.f32.vlgmr.msra.gmra.mrb[2].mxu1 %v1673_v37 }
 0x246   :  { %1563 = vmatpush3.bf16.msra.mxu1 %v1901_v9  ;;  %1325 = vmatprep.mubr.msk.f32.mxu1 %vm1798_vm0, %v1799_v1 }
 0x247   :  { %1564 = vmatprep.subr.bf16.mxu1 %v1797_v0 }
 0x24a   :  { %1566 = vmatpush3.bf16.msra.mxu1 %v1904_v15 }
 0x24b   :  { %1567 = vmatprep.subr.bf16.mxu1 %v1797_v0 }
 0x24e   :  { %1569 = vmatpush3.bf16.msra.mxu1 %v1908_v21 }
 0x24f   :  { %1570 = vmatprep.subr.bf16.mxu1 %v1797_v0 }
 0x252   :  { %1572 = vmatpush3.bf16.msra.mxu1 %v1912_v28 }
 0x253   :  { %1573 = vmatprep.subr.bf16.mxu1 %v1797_v0 }
 0x256   :  { %1575 = vmatpush3.bf16.msra.mxu1 %v1916_v34 }
 0x257   :  { %1576 = vmatprep.subr.bf16.mxu1 %v1797_v0 }
 0x25a   :  { %1578 = vmatpush3.bf16.msra.mxu1 %v1920_v40 }
 0x25b   :  { %1579 = vmatprep.subr.bf16.mxu1 %v1797_v0 }
 0x25e   :  { %1581 = vmatpush3.bf16.msra.mxu1 %v1924_v46 }
 0x25f   :  { %1582 = vmatprep.subr.bf16.mxu1 %v1797_v0 }
 0x262   :  { %1584 = vmatpush3.bf16.msra.mxu1 %v1928_v50 }
 0x263   :  { %1609 = vmatprep.subr.bf16.mxu1 %v1797_v0 }
 0x318   :  { %v499_v39 = vpop.f32.mrb[2].mxu1 }
 0x319   :  { %v500_v41 = vadd.f32 %v499_v39, %v186_v38  ;;  %v1257_v42 = vpop.f32.mrb[3].mxu1 }
 0x31b   :  { %v503_v43 = vmul.f32 %v1985_v3, %v500_v41 }
 0x31d   :  { %v505_v45 = vadd.f32 %v504_v44, %v503_v43 }
 0x31f   :  { %1674 = vtanh.f32 %v505_v45  ;;  %v586_v59 = vmul.f32 %v1979_v62, %v505_v45 }
 0x329   :  { %v1675_v47 = vpop.eup %1674 }
 0x32a   :  { %v507_v48 = vmul.f32 %v1675_v47, %v1997_v10 }
 0x32c   :  { %v509_v51 = vadd.f32 %v508_v49, %v507_v48 }
 0x32e   :  { %1676 = vtanh.f32 %v509_v51  ;;  %v590_v2 = vmul.f32 %v1992_v8, %v509_v51 }
 0x338   :  { %v1677_v52 = vpop.eup %1676 }
 0x339   :  { %512 = vst [vmem:[#allocation12 + $0x10] sm:$0xff] %v1677_v52  ;;  %1291 = vmatmul.mubr.f32.vlgmr.msra.gmra.mrb[10].mxu0 %v1677_v52 }
 0x33a   :  { %1587 = vmatpush3.bf16.msra.mxu0 %v1901_v9  ;;  %1360 = vmatprep.mubr.msk.f32.mxu0 %vm1798_vm0, %v1799_v1 }
 0x33b   :  { %1588 = vmatprep.subr.bf16.mxu0 %v1797_v0 }
 0x33e   :  { %1590 = vmatpush3.bf16.msra.mxu0 %v1904_v15 }
 0x33f   :  { %1591 = vmatprep.subr.bf16.mxu0 %v1797_v0 }
 0x342   :  { %1593 = vmatpush3.bf16.msra.mxu0 %v1908_v21 }
 0x343   :  { %1594 = vmatprep.subr.bf16.mxu0 %v1797_v0 }
 0x346   :  { %1596 = vmatpush3.bf16.msra.mxu0 %v1912_v28 }
 0x347   :  { %1597 = vmatprep.subr.bf16.mxu0 %v1797_v0 }
 0x34a   :  { %1599 = vmatpush3.bf16.msra.mxu0 %v1916_v34 }
 0x34b   :  { %1600 = vmatprep.subr.bf16.mxu0 %v1797_v0 }
 0x34e   :  { %1602 = vmatpush3.bf16.msra.mxu0 %v1920_v40 }
 0x34f   :  { %1603 = vmatprep.subr.bf16.mxu0 %v1797_v0 }
 0x352   :  { %1605 = vmatpush3.bf16.msra.mxu0 %v1924_v46 }
 0x353   :  { %1606 = vmatprep.subr.bf16.mxu0 %v1797_v0 }
 0x356   :  { %1608 = vmatpush3.bf16.msra.mxu0 %v1928_v50 }
 0x357   :  { %1633 = vmatprep.subr.bf16.mxu0 %v1797_v0 }
 0x40c   :  { %v581_v54 = vpop.f32.mrb[10].mxu0 }
 0x40d   :  { %v582_v55 = vadd.f32 %v581_v54, %v191_v53  ;;  %v1292_v56 = vpop.f32.mrb[11].mxu0 }
 0x40f   :  { %v585_v57 = vmul.f32 %v1985_v3, %v582_v55 }
 0x411   :  { %v587_v60 = vadd.f32 %v586_v59, %v585_v57 }
 0x413   :  { %1678 = vtanh.f32 %v587_v60  ;;  %v668_v14 = vmul.f32 %v1979_v62, %v587_v60 }
 0x41d   :  { %v1679_v61 = vpop.eup %1678 }
 0x41e   :  { %v589_v63 = vmul.f32 %v1679_v61, %v1997_v10 }
 0x420   :  { %v591_v4 = vadd.f32 %v590_v2, %v589_v63 }
 0x422   :  { %1680 = vtanh.f32 %v591_v4  ;;  %v672_v24 = vmul.f32 %v1992_v8, %v591_v4 }
 0x42c   :  { %v1681_v5 = vpop.eup %1680 }
 0x42d   :  { %594 = vst [vmem:[#allocation12 + $0x18] sm:$0xff] %v1681_v5  ;;  %1326 = vmatmul.mubr.f32.vlgmr.msra.gmra.mrb[4].mxu1 %v1681_v5 }
 0x42e   :  { %1611 = vmatpush3.bf16.msra.mxu1 %v1901_v9  ;;  %1395 = vmatprep.mubr.msk.f32.mxu1 %vm1798_vm0, %v1799_v1 }
 0x42f   :  { %1612 = vmatprep.subr.bf16.mxu1 %v1797_v0 }
 0x432   :  { %1614 = vmatpush3.bf16.msra.mxu1 %v1904_v15 }
 0x433   :  { %1615 = vmatprep.subr.bf16.mxu1 %v1797_v0 }
 0x436   :  { %1617 = vmatpush3.bf16.msra.mxu1 %v1908_v21 }
 0x437   :  { %1618 = vmatprep.subr.bf16.mxu1 %v1797_v0 }
 0x43a   :  { %1620 = vmatpush3.bf16.msra.mxu1 %v1912_v28 }
 0x43b   :  { %1621 = vmatprep.subr.bf16.mxu1 %v1797_v0 }
 0x43e   :  { %1623 = vmatpush3.bf16.msra.mxu1 %v1916_v34 }
 0x43f   :  { %1624 = vmatprep.subr.bf16.mxu1 %v1797_v0 }
 0x442   :  { %1626 = vmatpush3.bf16.msra.mxu1 %v1920_v40 }
 0x443   :  { %1627 = vmatprep.subr.bf16.mxu1 %v1797_v0 }
 0x446   :  { %1629 = vmatpush3.bf16.msra.mxu1 %v1924_v46 }
 0x447   :  { %1630 = vmatprep.subr.bf16.mxu1 %v1797_v0 }
 0x44a   :  { %1632 = vmatpush3.bf16.msra.mxu1 %v1928_v50 }
 0x500   :  { %v663_v7 = vpop.f32.mrb[4].mxu1 }
 0x501   :  { %v664_v11 = vadd.f32 %v663_v7, %v196_v6  ;;  %v1327_v12 = vpop.f32.mrb[5].mxu1 }
 0x503   :  { %v667_v13 = vmul.f32 %v1985_v3, %v664_v11 }
 0x505   :  { %v669_v16 = vadd.f32 %v668_v14, %v667_v13 }
 0x507   :  { %1682 = vtanh.f32 %v669_v16 }
 0x511   :  { %v1683_v17 = vpop.eup %1682 }
 0x512   :  { %v671_v18 = vmul.f32 %v1683_v17, %v1997_v10 }
 0x514   :  { %v673_v25 = vadd.f32 %v672_v24, %v671_v18 }
 0x516   :  { %1684 = vtanh.f32 %v673_v25 }
 0x520   :  { %v1685_v26 = vpop.eup %1684 }
 0x521   :  { %676 = vst [vmem:[#allocation12 + $0x20] sm:$0xff] %v1685_v26  ;;  %1361 = vmatmul.mubr.f32.vlgmr.msra.gmra.mrb[12].mxu0 %v1685_v26 }
 0x522   :  { %1635 = vmatpush3.bf16.msra.mxu0 %v1901_v9  ;;  %1430 = vmatprep.mubr.msk.f32.mxu0 %vm1798_vm0, %v1799_v1  ;;  %v201_v1 = vadd.f32 %v2021_v19, %v1974_v58  ;;  %v206_v19 = vadd.f32 %v1974_v58, %v2027_v23  ;;  %v211_v23 = vadd.f32 %v2025_v22, %v1974_v58 }
 0x523   :  { %1636 = vmatprep.subr.bf16.mxu0 %v1797_v0 }
 0x526   :  { %1638 = vmatpush3.bf16.msra.mxu0 %v1904_v15 }
 0x527   :  { %1639 = vmatprep.subr.bf16.mxu0 %v1797_v0 }
 0x52a   :  { %1641 = vmatpush3.bf16.msra.mxu0 %v1908_v21 }
 0x52b   :  { %1642 = vmatprep.subr.bf16.mxu0 %v1797_v0 }
 0x52e   :  { %1644 = vmatpush3.bf16.msra.mxu0 %v1912_v28 }
 0x52f   :  { %1645 = vmatprep.subr.bf16.mxu0 %v1797_v0 }
 0x532   :  { %1647 = vmatpush3.bf16.msra.mxu0 %v1916_v34  ;;  %v750_v34 = vmul.f32 %v1979_v62, %v669_v16 }
 0x533   :  { %1648 = vmatprep.subr.bf16.mxu0 %v1797_v0 }
 0x536   :  { %1650 = vmatpush3.bf16.msra.mxu0 %v1920_v40 }
 0x537   :  { %1651 = vmatprep.subr.bf16.mxu0 %v1797_v0 }
 0x53a   :  { %1653 = vmatpush3.bf16.msra.mxu0 %v1924_v46  ;;  %v754_v46 = vmul.f32 %v1992_v8, %v673_v25 }
 0x53b   :  { %1654 = vmatprep.subr.bf16.mxu0 %v1797_v0 }
 0x53e   :  { %1656 = vmatpush3.bf16.msra.mxu0 %v1928_v50 }
 0x5f4   :  { %v745_v9 = vpop.f32.mrb[12].mxu0 }
 0x5f5   :  { %v746_v15 = vadd.f32 %v745_v9, %v201_v1  ;;  %v1362_v21 = vpop.f32.mrb[13].mxu0 }
 0x5f7   :  { %v749_v28 = vmul.f32 %v1985_v3, %v746_v15 }
 0x5f9   :  { %v751_v20 = vadd.f32 %v750_v34, %v749_v28 }
 0x5fb   :  { %1686 = vtanh.f32 %v751_v20  ;;  %v832_v33 = vmul.f32 %v1979_v62, %v751_v20 }
 0x605   :  { %v1687_v40 = vpop.eup %1686 }
 0x606   :  { %v753_v27 = vmul.f32 %v1687_v40, %v1997_v10 }
 0x608   :  { %v755_v0 = vadd.f32 %v754_v46, %v753_v27 }
 0x60a   :  { %1688 = vtanh.f32 %v755_v0  ;;  %v836_v38 = vmul.f32 %v1992_v8, %v755_v0 }
 0x614   :  { %v1689_v50 = vpop.eup %1688 }
 0x615   :  { %758 = vst [vmem:[#allocation12 + $0x28] sm:$0xff] %v1689_v50  ;;  %1396 = vmatmul.mubr.f32.vlgmr.msra.gmra.mrb[6].mxu1 %v1689_v50 }
 0x6e8   :  { %v827_v29 = vpop.f32.mrb[6].mxu1 }
 0x6e9   :  { %v828_v30 = vadd.f32 %v827_v29, %v206_v19  ;;  %v1397_v31 = vpop.f32.mrb[7].mxu1 }
 0x6eb   :  { %v831_v32 = vmul.f32 %v1985_v3, %v828_v30 }
 0x6ed   :  { %v833_v35 = vadd.f32 %v832_v33, %v831_v32 }
 0x6ef   :  { %1690 = vtanh.f32 %v833_v35  ;;  %v914_v47 = vmul.f32 %v1979_v62, %v833_v35 }
 0x6f9   :  { %v1691_v36 = vpop.eup %1690 }
 0x6fa   :  { %v835_v37 = vmul.f32 %v1691_v36, %v1997_v10 }
 0x6fc   :  { %v837_v39 = vadd.f32 %v836_v38, %v835_v37 }
 0x6fe   :  { %1692 = vtanh.f32 %v837_v39  ;;  %v918_v52 = vmul.f32 %v1992_v8, %v837_v39 }
 0x708   :  { %v1693_v41 = vpop.eup %1692 }
 0x709   :  { %840 = vst [vmem:[#allocation12 + $0x30] sm:$0xff] %v1693_v41  ;;  %1431 = vmatmul.mubr.f32.vlgmr.msra.gmra.mrb[14].mxu0 %v1693_v41 }
 0x7dc   :  { %v909_v42 = vpop.f32.mrb[14].mxu0 }
 0x7dd   :  { %v910_v43 = vadd.f32 %v909_v42, %v211_v23  ;;  %v1432_v44 = vpop.f32.mrb[15].mxu0 }
 0x7df   :  { %v913_v45 = vmul.f32 %v1985_v3, %v910_v43 }
 0x7e1   :  { %v915_v48 = vadd.f32 %v914_v47, %v913_v45 }
 0x7e3   :  { %1694 = vtanh.f32 %v915_v48 }
 0x7ed   :  { %v1695_v49 = vpop.eup %1694 }
 0x7ee   :  { %v917_v51 = vmul.f32 %v1695_v49, %v1997_v10 }
 0x7f0   :  { %v919_v53 = vadd.f32 %v918_v52, %v917_v51 }
 0x7f2   :  { %1696 = vtanh.f32 %v919_v53 }
 0x7fc   :  { %v1697_v58 = vpop.eup %1696 }
 0x7fd   :  { %922 = vst [vmem:[#allocation12 + $0x38] sm:$0xff] %v1697_v58 }
 0x7fe   :  { %1775 = shalt.err (!%p1772_p0)
}
 0x7ff   :  { %s1776_s28 = scalar_lea.hbm %s2162_s8, 1024 }
 0x800   :  { %p1777_p1 = scmp.ne.s32.totalorder %s2162_s8, %s1776_s28  ;;  %p1780_p2 = scmp.lt.u32.totalorder %s1776_s28, %s2162_s8 }
 0x802   :  { %p1782_p3 = pnand %p1780_p2, %p1777_p1 }
 0x804   :  { %1785 = shalt.err (!%p1782_p3)
}
 0x805   :  { %937 = dma.vmem_to_hbm [thread:$0]  %s932_s5, 1024, %s2162_s8, [#allocation8], %s1794_s17, %s1794_s17, %s1795_s18  }
 0x806   :  { %1790 = dma.done.wait [#allocation8], 1024  }
 0x807   :  { %1791 = vsyncadd [#allocation8], 4294966272 }
 0x808   :  { %941 = vsyncpa [#allocation7], 1 }
 0x809   :  { %942 = vsyncpa [#allocation10], 1 }
 0x80a   :  { %943 = vsyncpa [#allocation8], 1 }

</bundles_post_ra>
